<compile_context>
chip_gen: v5e
topology: v5e:2x2
jax: 0.10.0
libtpu: 0.0.40
codegen_flags: <defaults>
</compile_context>

<pallas_src>
import jax
import jax.numpy as jnp
from jax.experimental import pallas as pl
from jax.experimental.pallas import tpu as pltpu


def _round_up(n, m):
    return ((n + m - 1) // m) * m


def _cdiv(a, b):
    return -(-a // b)


def dqn_kernel(x_ref, w1_ref, w2_ref, w3_ref, b1_ref, b2_ref, b3_ref, o_ref):
    # x_ref: [TB, in]       activation tile (f32 in HBM; cast to bf16 for MXU)
    # w*_ref: bf16 weights  [in,hid], [hid,hid], [hid,out]  (VMEM-resident)
    # b*_ref: f32 biases    [1,hid], [1,hid], [1,out]
    # o_ref: [TB, out]      f32 Q-values
    x = x_ref[...].astype(jnp.bfloat16)
    h1 = jnp.dot(x, w1_ref[...], preferred_element_type=jnp.float32) + b1_ref[...]
    h1 = jnp.maximum(h1, 0.0).astype(jnp.bfloat16)
    h2 = jnp.dot(h1, w2_ref[...], preferred_element_type=jnp.float32) + b2_ref[...]
    h2 = jnp.maximum(h2, 0.0).astype(jnp.bfloat16)
    out = jnp.dot(h2, w3_ref[...], preferred_element_type=jnp.float32) + b3_ref[...]
    o_ref[...] = out.astype(o_ref.dtype)


def pack_params(params):
    """bf16 weights (MXU-native, half the weight DMA bytes), f32 biases."""
    return {
        "w1": params["w1"].astype(jnp.bfloat16),
        "w2": params["w2"].astype(jnp.bfloat16),
        "w3": params["w3"].astype(jnp.bfloat16),
        "b1": params["b1"].astype(jnp.float32).reshape(1, -1),
        "b2": params["b2"].astype(jnp.float32).reshape(1, -1),
        "b3": params["b3"].astype(jnp.float32).reshape(1, -1),
    }


def simple_dqn_forward(x, packed, *, block_batch=1024):
    """x: [B, input_size] float32.  packed: dict from pack_params."""
    B, input_size = x.shape
    hidden_size = packed["w1"].shape[1]
    output_size = packed["w3"].shape[1]

    # --- batch tiling -----------------------------------------------------
    tb_cap = max(8, (int(block_batch) // 8) * 8)          # 8-aligned tile cap
    min_tiles = 2 if B >= 16 else 1                        # let v7x's 2nd TC help
    num_tiles = max(_cdiv(B, tb_cap), min_tiles)
    TB = _round_up(_cdiv(B, num_tiles), 8)                 # multiple of 8 sublanes
    Bp = TB * num_tiles                                    # pads < num_tiles*8 rows

    x_in = x
    if Bp != B:
        x_in = jnp.pad(x, ((0, Bp - B), (0, 0)))           # rows only; no lane pad

    grid = (Bp // TB,)
    const = lambda i: (0, 0)                                # weights/biases: fetch once

    flops = 2 * Bp * (
        input_size * hidden_size + hidden_size * hidden_size + hidden_size * output_size
    )
    bytes_accessed = (
        x_in.size * x_in.dtype.itemsize
        + sum(v.size * v.dtype.itemsize for v in packed.values())
        + Bp * output_size * 4
    )

    # NOTE: constant index_maps mean the weight/bias tiles are DMA'd once and
    # reused; their double-buffer VMEM cost is a few KiB, so we skip
    # pipeline_mode=pl.Buffered(1) to keep the lowering maximally portable.
    out = pl.pallas_call(
        dqn_kernel,
        out_shape=jax.ShapeDtypeStruct((Bp, output_size), jnp.float32),
        grid=grid,
        in_specs=[
            pl.BlockSpec((TB, input_size), lambda i: (i, 0)),      # batch-tiled x
            pl.BlockSpec((input_size, hidden_size), const),        # w1
            pl.BlockSpec((hidden_size, hidden_size), const),       # w2
            pl.BlockSpec((hidden_size, output_size), const),       # w3
            pl.BlockSpec((1, hidden_size), const),                 # b1
            pl.BlockSpec((1, hidden_size), const),                 # b2
            pl.BlockSpec((1, output_size), const),                 # b3
        ],
        out_specs=pl.BlockSpec((TB, output_size), lambda i: (i, 0)),
        compiler_params=pltpu.CompilerParams(
            dimension_semantics=("parallel",),   # batch tiles independent -> megacore
        ),
        cost_estimate=pl.CostEstimate(
            flops=flops, transcendentals=0, bytes_accessed=bytes_accessed
        ),
    )(
        x_in,
        packed["w1"], packed["w2"], packed["w3"],
        packed["b1"], packed["b2"], packed["b3"],
    )

    return out[:B] if Bp != B else out


def init_params(key, input_size, hidden_size, output_size):
    """Mimics torch.nn.Linear default init U(-1/sqrt(fan_in), 1/sqrt(fan_in)).

    Weights stored [in_features, out_features] (transposed vs PyTorch) so the
    kernel computes x @ W + b directly.
    """
    ks = jax.random.split(key, 6)

    def linear(kw, kb, fan_in, fan_out):
        bound = 1.0 / jnp.sqrt(jnp.float32(fan_in))
        w = jax.random.uniform(kw, (fan_in, fan_out), jnp.float32, -bound, bound)
        b = jax.random.uniform(kb, (1, fan_out), jnp.float32, -bound, bound)
        return w, b

    w1, b1 = linear(ks[0], ks[1], input_size, hidden_size)
    w2, b2 = linear(ks[2], ks[3], hidden_size, hidden_size)
    w3, b3 = linear(ks[4], ks[5], hidden_size, output_size)
    return {"w1": w1, "b1": b1, "w2": w2, "b2": b2, "w3": w3, "b3": b3}


if __name__ == "__main__":
    input_size, hidden_size, output_size = 16, 32, 4
    batch = 8

    key = jax.random.PRNGKey(0)
    k_params, k_x = jax.random.split(key)
    params = init_params(k_params, input_size, hidden_size, output_size)
    x = jax.random.normal(k_x, (batch, input_size), jnp.float32)

    packed = pack_params(params)

    out = simple_dqn_forward(x, packed)
    out = jax.block_until_ready(out)
    assert out.shape == (batch, output_size)

    # 1) Mirrored reference: identical bf16 rounding / f32 accumulation as the
    #    kernel -> tight structural check (layer order, biases, ReLU, tiling).
    xb = x.astype(jnp.bfloat16)
    m1 = jnp.maximum(
        jnp.dot(xb, packed["w1"], preferred_element_type=jnp.float32) + packed["b1"], 0.0
    )
    m2 = jnp.maximum(
        jnp.dot(m1.astype(jnp.bfloat16), packed["w2"], preferred_element_type=jnp.float32)
        + packed["b2"],
        0.0,
    )
    ref_bf16 = (
        jnp.dot(m2.astype(jnp.bfloat16), packed["w3"], preferred_element_type=jnp.float32)
        + packed["b3"]
    )
    assert jnp.allclose(out, ref_bf16, atol=1e-2, rtol=1e-2)

    # 2) Full-precision reference (original PyTorch-semantics math); loose
    #    tolerance accounts for the intentional bf16 weight/activation rounding.
    h1 = jnp.maximum(x @ params["w1"] + params["b1"], 0.0)
    h2 = jnp.maximum(h1 @ params["w2"] + params["b2"], 0.0)
    ref_f32 = h2 @ params["w3"] + params["b3"]
    assert jnp.allclose(out, ref_f32, atol=1.5e-1, rtol=1e-1)

    print("KERNEL_OK")
</pallas_src>

<mosaic_0001>
module attributes {stable_mosaic.version = 11 : i64} {
  func.func @dqn_kernel(%arg0: i32, %arg1: memref<8x16xf32, #tpu.memory_space<vmem>>, %arg2: memref<16x32xbf16, #tpu.memory_space<vmem>>, %arg3: memref<32x32xbf16, #tpu.memory_space<vmem>>, %arg4: memref<32x4xbf16, #tpu.memory_space<vmem>>, %arg5: memref<1x32xf32, #tpu.memory_space<vmem>>, %arg6: memref<1x32xf32, #tpu.memory_space<vmem>>, %arg7: memref<1x4xf32, #tpu.memory_space<vmem>>, %arg8: memref<8x4xf32, #tpu.memory_space<vmem>>) attributes {dimension_semantics = [#tpu.dimension_semantics<parallel>], iteration_bounds = array<i64: 1>, scalar_prefetch = 0 : i64, scratch_operands = 0 : i64, tpu.core_type = #tpu.core_type<tc>, window_params = [{transform_indices = @transform_0, window_bounds = array<i64: 8, 16>}, {pipeline_mode = #tpu.pipeline_mode<synchronous>, transform_indices = @transform_1, window_bounds = array<i64: 16, 32>}, {pipeline_mode = #tpu.pipeline_mode<synchronous>, transform_indices = @transform_2, window_bounds = array<i64: 32, 32>}, {pipeline_mode = #tpu.pipeline_mode<synchronous>, transform_indices = @transform_3, window_bounds = array<i64: 32, 4>}, {pipeline_mode = #tpu.pipeline_mode<synchronous>, transform_indices = @transform_4, window_bounds = array<i64: 1, 32>}, {pipeline_mode = #tpu.pipeline_mode<synchronous>, transform_indices = @transform_5, window_bounds = array<i64: 1, 32>}, {pipeline_mode = #tpu.pipeline_mode<synchronous>, transform_indices = @transform_6, window_bounds = array<i64: 1, 4>}, {transform_indices = @transform_7, window_bounds = array<i64: 8, 4>}]} {
    %c0 = arith.constant 0 : index
    %c0_0 = arith.constant 0 : index
    %0 = vector.load %arg1[%c0, %c0_0] : memref<8x16xf32, #tpu.memory_space<vmem>>, vector<8x16xf32>
    %1 = arith.truncf %0 : vector<8x16xf32> to vector<8x16xbf16>
    %c0_1 = arith.constant 0 : index
    %c0_2 = arith.constant 0 : index
    %2 = vector.load %arg2[%c0_1, %c0_2] : memref<16x32xbf16, #tpu.memory_space<vmem>>, vector<16x32xbf16>
    %cst = arith.constant dense<0.000000e+00> : vector<8x32xf32>
    %3 = tpu.matmul %1, %2, %cst {dimension_numbers = #tpu.dot_dimension_numbers<[1], [0], [0], [1], [0, 0, 1, 1], [], []>} : vector<8x16xbf16>, vector<16x32xbf16>, vector<8x32xf32> -> vector<8x32xf32>
    %c0_3 = arith.constant 0 : index
    %c0_4 = arith.constant 0 : index
    %4 = vector.load %arg5[%c0_3, %c0_4] : memref<1x32xf32, #tpu.memory_space<vmem>>, vector<1x32xf32>
    %5 = vector.broadcast %4 : vector<1x32xf32> to vector<8x32xf32>
    %6 = arith.addf %3, %5 : vector<8x32xf32>
    %cst_5 = arith.constant 0.000000e+00 : f32
    %7 = vector.broadcast %cst_5 : f32 to vector<8x32xf32>
    %8 = arith.maximumf %6, %7 : vector<8x32xf32>
    %9 = arith.truncf %8 : vector<8x32xf32> to vector<8x32xbf16>
    %c0_6 = arith.constant 0 : index
    %c0_7 = arith.constant 0 : index
    %10 = vector.load %arg3[%c0_6, %c0_7] : memref<32x32xbf16, #tpu.memory_space<vmem>>, vector<32x32xbf16>
    %cst_8 = arith.constant dense<0.000000e+00> : vector<8x32xf32>
    %11 = tpu.matmul %9, %10, %cst_8 {dimension_numbers = #tpu.dot_dimension_numbers<[1], [0], [0], [1], [0, 0, 1, 1], [], []>} : vector<8x32xbf16>, vector<32x32xbf16>, vector<8x32xf32> -> vector<8x32xf32>
    %c0_9 = arith.constant 0 : index
    %c0_10 = arith.constant 0 : index
    %12 = vector.load %arg6[%c0_9, %c0_10] : memref<1x32xf32, #tpu.memory_space<vmem>>, vector<1x32xf32>
    %13 = vector.broadcast %12 : vector<1x32xf32> to vector<8x32xf32>
    %14 = arith.addf %11, %13 : vector<8x32xf32>
    %cst_11 = arith.constant 0.000000e+00 : f32
    %15 = vector.broadcast %cst_11 : f32 to vector<8x32xf32>
    %16 = arith.maximumf %14, %15 : vector<8x32xf32>
    %17 = arith.truncf %16 : vector<8x32xf32> to vector<8x32xbf16>
    %c0_12 = arith.constant 0 : index
    %c0_13 = arith.constant 0 : index
    %18 = vector.load %arg4[%c0_12, %c0_13] : memref<32x4xbf16, #tpu.memory_space<vmem>>, vector<32x4xbf16>
    %cst_14 = arith.constant dense<0.000000e+00> : vector<8x4xf32>
    %19 = tpu.matmul %17, %18, %cst_14 {dimension_numbers = #tpu.dot_dimension_numbers<[1], [0], [0], [1], [0, 0, 1, 1], [], []>} : vector<8x32xbf16>, vector<32x4xbf16>, vector<8x4xf32> -> vector<8x4xf32>
    %c0_15 = arith.constant 0 : index
    %c0_16 = arith.constant 0 : index
    %20 = vector.load %arg7[%c0_15, %c0_16] : memref<1x4xf32, #tpu.memory_space<vmem>>, vector<1x4xf32>
    %21 = vector.broadcast %20 : vector<1x4xf32> to vector<8x4xf32>
    %22 = arith.addf %19, %21 : vector<8x4xf32>
    %c0_17 = arith.constant 0 : index
    %c0_18 = arith.constant 0 : index
    %23 = vector.load %arg8[%c0_17, %c0_18] : memref<8x4xf32, #tpu.memory_space<vmem>>, vector<8x4xf32>
    tpu.vector_store %arg8[%c0_17, %c0_18], %22 {strides = array<i32>} : memref<8x4xf32, #tpu.memory_space<vmem>>, vector<8x4xf32>,
    return
  }
  func.func @transform_0(%arg0: i32) -> (i32, i32) {
    %c0_i32 = arith.constant 0 : i32
    %c0_i32_0 = arith.constant 0 : i32
    return %arg0, %c0_i32 : i32, i32
  }
  func.func @transform_1(%arg0: i32) -> (i32, i32) {
    %c0_i32 = arith.constant 0 : i32
    %c0_i32_0 = arith.constant 0 : i32
    %c0_i32_1 = arith.constant 0 : i32
    return %c0_i32, %c0_i32_0 : i32, i32
  }
  func.func @transform_2(%arg0: i32) -> (i32, i32) {
    %c0_i32 = arith.constant 0 : i32
    %c0_i32_0 = arith.constant 0 : i32
    %c0_i32_1 = arith.constant 0 : i32
    return %c0_i32, %c0_i32_0 : i32, i32
  }
  func.func @transform_3(%arg0: i32) -> (i32, i32) {
    %c0_i32 = arith.constant 0 : i32
    %c0_i32_0 = arith.constant 0 : i32
    %c0_i32_1 = arith.constant 0 : i32
    return %c0_i32, %c0_i32_0 : i32, i32
  }
  func.func @transform_4(%arg0: i32) -> (i32, i32) {
    %c0_i32 = arith.constant 0 : i32
    %c0_i32_0 = arith.constant 0 : i32
    %c0_i32_1 = arith.constant 0 : i32
    return %c0_i32, %c0_i32_0 : i32, i32
  }
  func.func @transform_5(%arg0: i32) -> (i32, i32) {
    %c0_i32 = arith.constant 0 : i32
    %c0_i32_0 = arith.constant 0 : i32
    %c0_i32_1 = arith.constant 0 : i32
    return %c0_i32, %c0_i32_0 : i32, i32
  }
  func.func @transform_6(%arg0: i32) -> (i32, i32) {
    %c0_i32 = arith.constant 0 : i32
    %c0_i32_0 = arith.constant 0 : i32
    %c0_i32_1 = arith.constant 0 : i32
    return %c0_i32, %c0_i32_0 : i32, i32
  }
  func.func @transform_7(%arg0: i32) -> (i32, i32) {
    %c0_i32 = arith.constant 0 : i32
    %c0_i32_0 = arith.constant 0 : i32
    return %arg0, %c0_i32 : i32, i32
  }
}

</mosaic_0001>

<bundles_post_ra>
// kernel: tpu_custom_call.1
= control target key start
LH: loop header
LB: loop body
LE: loop exit
PB: predicated region body
PF: predicated region fallthrough
CT: control target
= control target key end

     0   :  { %12 = vsyncpa [#allocation3], 0  ;;  %s334_s0 = inlined_call_operand.hbm [shape: f32[8,16], index: 0, kind: input, shape index: {}]   ;;  %s335_s1 = inlined_call_operand.hbm [shape: bf16[16,32], index: 1, kind: input, shape index: {}]   ;;  %s336_s2 = inlined_call_operand.vmem [shape: bf16[32,32], index: 2, kind: input, shape index: {}]   ;;  %s337_s3 = inlined_call_operand.vmem [shape: bf16[32,4], index: 3, kind: input, shape index: {}]   ;;  %s338_s4 = inlined_call_operand.vmem [shape: f32[1,32], index: 4, kind: input, shape index: {}]   ;;  %s339_s5 = inlined_call_operand.vmem [shape: f32[1,32], index: 5, kind: input, shape index: {}]   ;;  %s340_s6 = inlined_call_operand.vmem [shape: f32[1,4], index: 6, kind: input, shape index: {}]   ;;  %s341_s7 = inlined_call_operand.vmem [shape: f32[8,4], index: 7, kind: output, shape index: {}]  }
   0x1   :  { %s19_s26 = sshll.u32 %s334_s0, 4  ;;  %s20_s26 = int_to_ptr.hbm [resolvable:$true] %s19_s26 }
   0x2   :  { %13 = vsyncpa [#allocation5], 0  ;;  %s260_s27 = smov [#allocation2]   ;;  %s29_s8 = sshll.u32 %s335_s1, 4  ;;  %s30_s8 = int_to_ptr.hbm [resolvable:$true] %s29_s8 }
   0x3   :  { %s21_s28 = sshll.u32 %s260_s27, 4  ;;  %s261_s9 = smov [#allocation4]   ;;  %s22_s28 = int_to_ptr.vmem [resolvable:$true] %s21_s28 }
   0x4   :  { %24 = dma.hbm_to_vmem [thread:$0]  %s20_s26, 128, %s22_s28, [#allocation3]  }
   0x5   :  { %s31_s10 = sshll.u32 %s261_s9, 4  ;;  %s262_s11 = smov 64   ;;  %s32_s10 = int_to_ptr.vmem [resolvable:$true] %s31_s10 }
   0x6   :  { %s263_s12 = smov 4  }
   0x7   :  { %37 = dma.hbm_to_vmem [thread:$0]  %s30_s8, 128, %s32_s10, [#allocation5], %s262_s11, %s262_s11, %s263_s12  }
   0x8   :  { %256 = dma.done.wait [#allocation3], 128  }
   0x9   :  { %257 = vsyncadd [#allocation3], 4294967168 }
   0xa   :  { %258 = dma.done.wait [#allocation5], 128  }
   0xb   :  { %259 = vsyncadd [#allocation5], 4294967168  ;;  %v196_v0 = vld [vmem:[#allocation4] sm:$0xff]  ;;  %v57_v1 = vld [vmem:[#allocation2] sm:$0xff]  ;;  %vm71_vm0 = vcmask 130048   ;;  %vm110_vm1 = vcmask 261120  }
   0xc   :  { %v58_v2 = vpack.c.bf16 %v57_v1, %v57_v1  ;;  %82 = vmatpush.bf16.msra.mxu0 %v196_v0  ;;  %v198_v3 = vld [vmem:[%s336_s2 + $0x8] sm:$0xff]  ;;  %v197_v4 = vld [vmem:[%s336_s2] sm:$0xff]  ;;  %vm165_vm2 = vcmask 31744  }
   0xd   :  { %120 = vmatpush.bf16.msra.mxu1 %v198_v3  ;;  %v205_v5 = vld [vmem:[%s338_s4] ss:$0 sm:$0xff]  ;;  %v200_v11 = vld [vmem:[%s337_s3 + $0x8] sm:$0xff] }
   0xe   :  { %158 = vmatpush.bf16.msra.mxu2 %v200_v11  ;;  %v199_v12 = vld [vmem:[%s337_s3] sm:$0xff] }
   0xf   :  { %177 = vmatmul.msk.bf16.vlgmr.msra.gmra.mxu0 %vm71_vm0, %v58_v2  ;;  %v206_v13 = vld [vmem:[%s339_s5] ss:$0 sm:$0xff] }
  0x10   :  { %v207_v19 = vld [vmem:[%s340_s6] ss:$0 sm:$0xff] }
  0x11   :  { %121 = vmatpush.bf16.msra.mxu1 %v197_v4 }
  0x12   :  { %159 = vmatpush.bf16.msra.mxu2 %v199_v12 }
  0x8c   :  { %v84_v6 = vpop.f32.mrf.mxu0 }
  0x8d   :  { %v85_v7 = vadd.f32 %v205_v5, %v84_v6 }
  0x8f   :  { %v88_v8 = vmax.f32 %v85_v7, 0.0 }
  0x91   :  { %v89_v9 = vpack.c.bf16 %v88_v8, %v88_v8 }
  0x93   :  { %186 = vmatmul.msk.bf16.vlgmr.msra.gmra.mxu1 %vm110_vm1, %v89_v9 }
  0x94   :  { %v86_v10 = vpop.f32.mrf.mxu0 }
 0x110   :  { %v123_v14 = vpop.f32.mrf.mxu1 }
 0x111   :  { %v124_v15 = vadd.f32 %v206_v13, %v123_v14 }
 0x113   :  { %v127_v16 = vmax.f32 %v124_v15, 0.0 }
 0x115   :  { %v128_v17 = vpack.c.bf16 %v127_v16, %v127_v16 }
 0x117   :  { %195 = vmatmul.msk.bf16.vlgmr.msra.gmra.mxu2 %vm110_vm1, %v128_v17 }
 0x118   :  { %v125_v18 = vpop.f32.mrf.mxu1 }
 0x19a   :  { %v161_v20 = vpop.f32.mrf.mxu2 }
 0x19b   :  { %v162_v21 = vadd.f32 %v207_v19, %v161_v20 }
 0x19d   :  { %166 = vst.msk [vmem:[%s341_s7] sm:$0xff] %vm165_vm2, %v162_v21 }
 0x1a2   :  { %v163_v22 = vpop.f32.mrf.mxu2 }
 0x1a3   :  { %171 = vsyncpa [#allocation3], 1 }
 0x1a4   :  { %172 = vsyncpa [#allocation5], 1 }

</bundles_post_ra>
